<compile_context>
chip_gen: v7x
topology: tpu7x:2x2x1
jax: 0.10.0
libtpu: 0.0.40
codegen_flags: <defaults>
</compile_context>

<pallas_src>
import functools

import jax
import jax.numpy as jnp
from jax import lax
from jax.experimental import pallas as pl
from jax.experimental.pallas import tpu as pltpu

_LANE = 128


def _wmse_kernel(n_rows, n_cols, tile_r, tile_s, needs_mask, split_rows,
                 w_ref, o_ref, t_ref, out_ref, acc_ref):
    s = pl.program_id(0)          # TensorCore split index ("parallel")
    i = pl.program_id(1)          # row-tile index within this split
    j = pl.program_id(2)          # col-tile index within this split
    ni = pl.num_programs(1)
    nj = pl.num_programs(2)

    # Zero the accumulator at the first reduction step of this split.
    @pl.when((i == 0) & (j == 0))
    def _():
        acc_ref[...] = jnp.zeros_like(acc_ref)

    # Upcast after the (possibly low-precision) HBM load; compute in f32.
    o = o_ref[...].astype(jnp.float32)
    t = t_ref[...].astype(jnp.float32)
    w = w_ref[...].astype(jnp.float32)          # (tile_r, 1) -> broadcasts
    d = o - t
    contrib = w * (d * d)

    if needs_mask:
        # Ragged tail: zero out-of-range rows/cols (also kills OOB garbage;
        # jnp.where selects 0.0 even if the discarded branch is NaN/Inf).
        if split_rows:
            row_blk = s * ni + i
            col_blk = j
        else:
            row_blk = i
            col_blk = s * nj + j
        rows = row_blk * tile_r + lax.broadcasted_iota(
            jnp.int32, (tile_r, tile_s), 0)
        cols = col_blk * tile_s + lax.broadcasted_iota(
            jnp.int32, (tile_r, tile_s), 1)
        contrib = jnp.where((rows < n_rows) & (cols < n_cols), contrib, 0.0)

    # Pure-VPU elementwise accumulation; no per-step cross-lane reduction.
    acc_ref[...] += contrib

    # Single XLU reduction + single lane-dense output store per split.
    @pl.when((i == ni - 1) & (j == nj - 1))
    def _():
        total = jnp.sum(acc_ref[...])
        out_ref[...] = jnp.full((8, _LANE), total, dtype=jnp.float32)


def _pick_tile(dim, unit, cap):
    """Largest block size <= cap satisfying the TPU tiling rule:
    a multiple of `unit`, or the full dimension."""
    if dim <= unit:
        return dim
    return min(cap, (dim // unit) * unit)


def weighted_mse_loss(weights, output, target, *,
                      row_tile_cap=512, col_tile_cap=2048, nsplit=2):
    """mean(weights * (output - target)**2) for NCHW inputs with per-channel
    weights broadcastable as (1, C, 1, 1) (or (C,))."""
    assert output.shape == target.shape and output.ndim == 4
    B, C, H, W = output.shape
    R, S = B * C, H * W
    n_total = B * C * H * W

    # Tiny per-row weight column (R floats) instead of a full broadcast tensor.
    w_chan = jnp.asarray(weights, dtype=jnp.float32).reshape(-1)
    assert w_chan.shape[0] == C, "weights must be per-channel (1,C,1,1) or (C,)"
    w_row = jnp.broadcast_to(w_chan[None, :], (B, C)).reshape(R, 1)

    # Contiguous reshapes are metadata-only; dtype untouched -> no extra pass.
    o2 = output.reshape(R, S)
    t2 = target.reshape(R, S)

    # Sub-32-bit dtypes pack along sublanes -> stricter row-tiling unit.
    itemsize = min(o2.dtype.itemsize, t2.dtype.itemsize)
    row_unit = {4: 8, 2: 16, 1: 32}.get(itemsize, 8)
    tr = _pick_tile(R, row_unit, row_tile_cap)
    ts = _pick_tile(S, _LANE, col_tile_cap)
    row_tiles = pl.cdiv(R, tr)
    col_tiles = pl.cdiv(S, ts)

    # Shard whichever reduction axis divides evenly across TensorCores (v7x);
    # on single-TC chips the split is a harmless serial outer loop.
    split_rows = True
    if nsplit < 1:
        nsplit = 1
    if nsplit > 1:
        if row_tiles % nsplit == 0:
            split_rows = True
        elif col_tiles % nsplit == 0:
            split_rows = False
        else:
            nsplit = 1
    if split_rows:
        per_i, per_j = row_tiles // nsplit, col_tiles
        w_map = lambda s, i, j: (s * per_i + i, 0)
        x_map = lambda s, i, j: (s * per_i + i, j)
    else:
        per_i, per_j = row_tiles, col_tiles // nsplit
        w_map = lambda s, i, j: (i, 0)
        x_map = lambda s, i, j: (i, s * per_j + j)

    needs_mask = (R % tr != 0) or (S % ts != 0)
    kernel = functools.partial(_wmse_kernel, R, S, tr, ts, needs_mask,
                               split_rows)

    in_bytes = R * S * (o2.dtype.itemsize + t2.dtype.itemsize) + R * 4
    out_bytes = nsplit * 8 * _LANE * 4
    cost = pl.CostEstimate(flops=4 * R * S, transcendentals=0,
                           bytes_accessed=in_bytes + out_bytes)

    partials = pl.pallas_call(
        kernel,
        out_shape=jax.ShapeDtypeStruct((nsplit * 8, _LANE), jnp.float32),
        grid_spec=pltpu.PrefetchScalarGridSpec(
            num_scalar_prefetch=0,
            grid=(nsplit, per_i, per_j),
            in_specs=[
                pl.BlockSpec((tr, 1), w_map),
                pl.BlockSpec((tr, ts), x_map),
                pl.BlockSpec((tr, ts), x_map),
            ],
            out_specs=pl.BlockSpec((8, _LANE), lambda s, i, j: (s, 0)),
            scratch_shapes=[pltpu.VMEM((tr, ts), jnp.float32)],
        ),
        compiler_params=pltpu.CompilerParams(
            dimension_semantics=("parallel", "arbitrary", "arbitrary"),
            vmem_limit_bytes=32 * 1024 * 1024,
        ),
        cost_estimate=cost,
    )(w_row, o2, t2)

    # Tiny finalization: one partial scalar per split, then the global mean.
    per_split_sums = partials.reshape(nsplit, 8, _LANE)[:, 0, 0]
    return jnp.sum(per_split_sums) / n_total


if __name__ == "__main__":
    root = jax.random.PRNGKey(0)

    def run_case(case_idx, shape, dtype, **kw):
        B, C, H, W = shape
        k_w, k_o, k_t = jax.random.split(jax.random.fold_in(root, case_idx), 3)
        weights = jax.random.uniform(k_w, (1, C, 1, 1), dtype=jnp.float32) + 0.5
        output = jax.random.normal(k_o, shape, dtype=jnp.float32).astype(dtype)
        target = jax.random.normal(k_t, shape, dtype=jnp.float32).astype(dtype)

        loss = jax.block_until_ready(weighted_mse_loss(weights, output, target, **kw))

        ref = jnp.mean(weights * (output.astype(jnp.float32)
                                  - target.astype(jnp.float32)) ** 2)
        assert jnp.allclose(loss, ref, rtol=1e-5, atol=1e-6), (shape, dtype, loss, ref)
        return loss

    # Main small example (NCHW, per-channel weights), f32, single-tile path.
    run_case(0, (2, 4, 16, 16), jnp.float32)
    # Multi-tile grid + 2-way row split + in-kernel bf16 -> f32 upcast.
    run_case(1, (4, 8, 16, 24), jnp.bfloat16,
             row_tile_cap=16, col_tile_cap=128, nsplit=2)
    # Ragged shapes (rows/cols not multiples of 8/128) -> in-kernel masking.
    run_case(2, (3, 5, 9, 31), jnp.float32,
             row_tile_cap=8, col_tile_cap=128)
    # Column-split path: row_tiles == 1, so the parallel axis shards columns.
    run_case(3, (2, 4, 32, 64), jnp.float32,
             row_tile_cap=512, col_tile_cap=128, nsplit=2)

    print("KERNEL_OK")
</pallas_src>

<mosaic_0001>
module attributes {stable_mosaic.version = 11 : i64} {
  func.func @_wmse_kernel(%arg0: i32, %arg1: i32, %arg2: i32, %arg3: memref<8x1xf32, #tpu.memory_space<vmem>>, %arg4: memref<8x256xf32, #tpu.memory_space<vmem>>, %arg5: memref<8x256xf32, #tpu.memory_space<vmem>>, %arg6: memref<8x128xf32, #tpu.memory_space<vmem>>, %arg7: memref<8x256xf32, #tpu.memory_space<vmem>>) attributes {dimension_semantics = [#tpu.dimension_semantics<parallel>, #tpu.dimension_semantics<arbitrary>, #tpu.dimension_semantics<arbitrary>], iteration_bounds = array<i64: 1, 1, 1>, scalar_prefetch = 0 : i64, scratch_operands = 1 : i64, tpu.core_type = #tpu.core_type<tc>, window_params = [{transform_indices = @transform_0, window_bounds = array<i64: 8, 1>}, {transform_indices = @transform_1, window_bounds = array<i64: 8, 256>}, {transform_indices = @transform_2, window_bounds = array<i64: 8, 256>}, {transform_indices = @transform_3, window_bounds = array<i64: 8, 128>}]} {
    %c0_i32 = arith.constant 0 : i32
    %0 = arith.cmpi eq, %arg1, %c0_i32 : i32
    %c0_i32_0 = arith.constant 0 : i32
    %1 = arith.cmpi eq, %arg2, %c0_i32_0 : i32
    %2 = arith.andi %0, %1 : i1
    %3 = arith.extui %2 : i1 to i32
    %c0_i32_1 = arith.constant 0 : i32
    %4 = arith.cmpi ne, %3, %c0_i32_1 : i32
    scf.if %4 {
      %cst = arith.constant 0.000000e+00 : f32
      %20 = vector.broadcast %cst : f32 to vector<8x256xf32>
      %c0_14 = arith.constant 0 : index
      %c0_15 = arith.constant 0 : index
      %21 = vector.load %arg7[%c0_14, %c0_15] : memref<8x256xf32, #tpu.memory_space<vmem>>, vector<8x256xf32>
      tpu.vector_store %arg7[%c0_14, %c0_15], %20 {strides = array<i32>} : memref<8x256xf32, #tpu.memory_space<vmem>>, vector<8x256xf32>,
    } else {
    }
    %c0 = arith.constant 0 : index
    %c0_2 = arith.constant 0 : index
    %5 = vector.load %arg4[%c0, %c0_2] : memref<8x256xf32, #tpu.memory_space<vmem>>, vector<8x256xf32>
    %c0_3 = arith.constant 0 : index
    %c0_4 = arith.constant 0 : index
    %6 = vector.load %arg5[%c0_3, %c0_4] : memref<8x256xf32, #tpu.memory_space<vmem>>, vector<8x256xf32>
    %c0_5 = arith.constant 0 : index
    %c0_6 = arith.constant 0 : index
    %7 = vector.load %arg3[%c0_5, %c0_6] : memref<8x1xf32, #tpu.memory_space<vmem>>, vector<8x1xf32>
    %8 = arith.subf %5, %6 : vector<8x256xf32>
    %9 = arith.mulf %8, %8 : vector<8x256xf32>
    %10 = vector.broadcast %7 : vector<8x1xf32> to vector<8x256xf32>
    %11 = arith.mulf %10, %9 : vector<8x256xf32>
    %c0_7 = arith.constant 0 : index
    %c0_8 = arith.constant 0 : index
    %12 = vector.load %arg7[%c0_7, %c0_8] : memref<8x256xf32, #tpu.memory_space<vmem>>, vector<8x256xf32>
    %13 = arith.addf %12, %11 : vector<8x256xf32>
    %c0_9 = arith.constant 0 : index
    %c0_10 = arith.constant 0 : index
    %14 = vector.load %arg7[%c0_9, %c0_10] : memref<8x256xf32, #tpu.memory_space<vmem>>, vector<8x256xf32>
    tpu.vector_store %arg7[%c0_9, %c0_10], %13 {strides = array<i32>} : memref<8x256xf32, #tpu.memory_space<vmem>>, vector<8x256xf32>,
    %c0_i32_11 = arith.constant 0 : i32
    %15 = arith.cmpi eq, %arg1, %c0_i32_11 : i32
    %c0_i32_12 = arith.constant 0 : i32
    %16 = arith.cmpi eq, %arg2, %c0_i32_12 : i32
    %17 = arith.andi %15, %16 : i1
    %18 = arith.extui %17 : i1 to i32
    %c0_i32_13 = arith.constant 0 : i32
    %19 = arith.cmpi ne, %18, %c0_i32_13 : i32
    scf.if %19 {
      %c0_14 = arith.constant 0 : index
      %c0_15 = arith.constant 0 : index
      %20 = vector.load %arg7[%c0_14, %c0_15] : memref<8x256xf32, #tpu.memory_space<vmem>>, vector<8x256xf32>
      %21 = vector.shape_cast %20 : vector<8x256xf32> to vector<1x8x256xf32>
      %cst = arith.constant dense<0.000000e+00> : vector<1xf32>
      %22 = vector.multi_reduction <add>, %21, %cst [1, 2] : vector<1x8x256xf32> to vector<1xf32>
      %23 = vector.shape_cast %22 : vector<1xf32> to vector<1x1x1xf32>
      %24 = vector.extract %23[0, 0, 0] : f32 from vector<1x1x1xf32>
      %25 = vector.broadcast %24 : f32 to vector<8x128xf32>
      %c0_16 = arith.constant 0 : index
      %c0_17 = arith.constant 0 : index
      %26 = vector.load %arg6[%c0_16, %c0_17] : memref<8x128xf32, #tpu.memory_space<vmem>>, vector<8x128xf32>
      tpu.vector_store %arg6[%c0_16, %c0_17], %25 {strides = array<i32>} : memref<8x128xf32, #tpu.memory_space<vmem>>, vector<8x128xf32>,
    } else {
    }
    return
  }
  func.func @transform_0(%arg0: i32, %arg1: i32, %arg2: i32) -> (i32, i32) {
    %c1_i32 = arith.constant 1 : i32
    %0 = arith.muli %arg0, %c1_i32 : i32
    %1 = arith.addi %0, %arg1 : i32
    %c0_i32 = arith.constant 0 : i32
    %c0_i32_0 = arith.constant 0 : i32
    return %1, %c0_i32 : i32, i32
  }
  func.func @transform_1(%arg0: i32, %arg1: i32, %arg2: i32) -> (i32, i32) {
    %c1_i32 = arith.constant 1 : i32
    %0 = arith.muli %arg0, %c1_i32 : i32
    %1 = arith.addi %0, %arg1 : i32
    %c0_i32 = arith.constant 0 : i32
    return %1, %arg2 : i32, i32
  }
  func.func @transform_2(%arg0: i32, %arg1: i32, %arg2: i32) -> (i32, i32) {
    %c1_i32 = arith.constant 1 : i32
    %0 = arith.muli %arg0, %c1_i32 : i32
    %1 = arith.addi %0, %arg1 : i32
    %c0_i32 = arith.constant 0 : i32
    return %1, %arg2 : i32, i32
  }
  func.func @transform_3(%arg0: i32, %arg1: i32, %arg2: i32) -> (i32, i32) {
    %c0_i32 = arith.constant 0 : i32
    %c0_i32_0 = arith.constant 0 : i32
    return %arg0, %c0_i32 : i32, i32
  }
}

</mosaic_0001>

<bundles_post_ra>
// kernel: tpu_custom_call.1
= control target key start
LH: loop header
LB: loop body
LE: loop exit
PB: predicated region body
PF: predicated region fallthrough
CT: control target
= control target key end

     0   :  { %8 = vsyncpa [#allocation4], 0  ;;  %s252_s0 = inlined_call_operand.vmem [shape: f32[8,1], index: 0, kind: input, shape index: {}]   ;;  %s253_s1 = inlined_call_operand.hbm [shape: f32[8,256], index: 1, kind: input, shape index: {}]   ;;  %s254_s2 = inlined_call_operand.vmem [shape: f32[8,256], index: 2, kind: input, shape index: {}]   ;;  %s255_s3 = inlined_call_operand.hbm [shape: f32[8,128], index: 3, kind: output, shape index: {}]  }
   0x1   :  { %9 = vsyncpa [#allocation5], 0  ;;  %s196_s12 = smov [#allocation3]   ;;  %s148_s16 = scalar_lea.hbm %s253_s1, 256 }
   0x2   :  { %s28_s13 = sshll.u32 %s196_s12, 4  ;;  %p149_p0 = scmp.ne.s32.totalorder %s253_s1, %s148_s16  ;;  %s29_s13 = int_to_ptr.vmem [resolvable:$true] %s28_s13 }
   0x3   :  { %p152_p1 = scmp.lt.u32.totalorder %s148_s16, %s253_s1 }
   0x5   :  { %p154_p2 = pnand %p152_p1, %p149_p0 }
   0x7   :  { %157 = shalt.err (!%p154_p2)
}
   0x8   :  { %s158_s21 = scalar_lea.vmem %s29_s13, 256  ;;  %p163_p4 = scmp.lt.s32.totalorder %s29_s13, %s29_s13 }
   0x9   :  { %p159_p3 = scmp.ne.s32.totalorder %s29_s13, %s158_s21  ;;  %p164_p5 = scmp.lt.s32.totalorder %s158_s21, %s158_s21 }
   0xb   :  { %p165_p6 = por %p164_p5, %p163_p4 }
   0xd   :  { %p166_p7 = pnand %p165_p6, %p159_p3 }
   0xf   :  { %169 = shalt.err (!%p166_p7)
}
  0x10   :  { %31 = dma.hbm_to_vmem [thread:$0]  %s253_s1, 256, %s29_s13, [#allocation4]  }
  0x11   :  { %192 = dma.done.wait [#allocation4], 256  }
  0x12   :  { %193 = vsyncadd [#allocation4], 4294967040  ;;  %v197_v0 = vmov 0   ;;  %v81_v1 = vld [vmem:[%s252_s0] sm:$0xff]  ;;  %v77_v2 = vld [vmem:[#allocation3] sm:$0xff]  ;;  %s198_s0 = smov [#allocation6]  }
  0x13   :  { %147 = vset.pattern.permute.xlu0 %v197_v0  ;;  %v78_v3 = vld [vmem:[#allocation3 + $0x8] sm:$0xff]  ;;  %v80_v5 = vld [vmem:[%s254_s2 + $0x8] sm:$0xff]  ;;  %s121_s1 = sshll.u32 %s198_s0, 4  ;;  %s122_s1 = int_to_ptr.vmem [resolvable:$true] %s121_s1 }
  0x14   :  { %88 = vperm.xlu0 %147, %v81_v1   ;;  %v79_v4 = vld [vmem:[%s254_s2] sm:$0xff]  ;;  %v83_v7 = vsub.f32 %v78_v3, %v80_v5  ;;  %s170_s30 = scalar_lea.vmem %s122_s1, 128  ;;  %p175_p9 = scmp.lt.s32.totalorder %s122_s1, %s122_s1 }
  0x15   :  { %v82_v6 = vsub.f32 %v77_v2, %v79_v4  ;;  %p171_p8 = scmp.ne.s32.totalorder %s122_s1, %s170_s30  ;;  %p176_p10 = scmp.lt.s32.totalorder %s170_s30, %s170_s30 }
  0x16   :  { %v85_v9 = vmul.f32 %v83_v7, %v83_v7 }
  0x17   :  { %v84_v8 = vmul.f32 %v82_v6, %v82_v6  ;;  %p177_p11 = por %p176_p10, %p175_p9 }
  0x19   :  { %p178_p12 = pnand %p177_p11, %p171_p8 }
  0x93   :  { %v89_v10 = vpop.permute.xlu0 %88 }
  0x94   :  { %v91_v11 = vmul.f32 %v89_v10, %v84_v8  ;;  %v92_v12 = vmul.f32 %v89_v10, %v85_v9 }
  0x96   :  { %v103_v13 = vadd.f32 %v92_v12, %v91_v11 }
  0x98   :  { %104 = vadd.xlane.f32.xlu0 %v103_v13 }
 0x125   :  { %v105_v14 = vpop.xlane.xlu0 %104 }
 0x126   :  { %v106_v15 = vrot.slane %v105_v14, 4 }
 0x128   :  { %v107_v16 = vadd.f32 %v106_v15, %v105_v14 }
 0x12a   :  { %v108_v17 = vrot.slane %v107_v16, 2 }
 0x12c   :  { %v109_v18 = vadd.f32 %v108_v17, %v107_v16 }
 0x12e   :  { %v110_v19 = vrot.slane %v109_v18, 1 }
 0x130   :  { %v111_v20 = vadd.f32 %v110_v19, %v109_v18 }
 0x132   :  { %142 = vpush %v111_v20 }
 0x163   :  { %s143_s2 = spop %142 }
 0x164   :  { %v113_v21 = vstv %s143_s2 }
 0x165   :  { %114 = vst [vmem:[#allocation6] sm:$0xff] %v113_v21 }
 0x166   :  { %181 = shalt.err (!%p178_p12)
}
 0x167   :  { %s182_s6 = scalar_lea.hbm %s255_s3, 128 }
 0x168   :  { %p183_p13 = scmp.ne.s32.totalorder %s255_s3, %s182_s6  ;;  %p186_p0 = scmp.lt.u32.totalorder %s182_s6, %s255_s3 }
 0x16a   :  { %p188_p1 = pnand %p186_p0, %p183_p13 }
 0x16c   :  { %191 = shalt.err (!%p188_p1)
}
 0x16d   :  { %124 = dma.vmem_to_hbm [thread:$0]  %s122_s1, 128, %s255_s3, [#allocation5]  }
 0x16e   :  { %194 = dma.done.wait [#allocation5], 128  }
 0x16f   :  { %195 = vsyncadd [#allocation5], 4294967168 }
 0x170   :  { %128 = vsyncpa [#allocation4], 1 }
 0x171   :  { %129 = vsyncpa [#allocation5], 1 }

</bundles_post_ra>
